<compile_context>
chip_gen: v7x
topology: tpu7x:2x2x1
jax: 0.10.0
libtpu: 0.0.40
codegen_flags: <defaults>
</compile_context>

<pallas_src>
import functools

import jax
import jax.numpy as jnp
from jax.experimental import pallas as pl
from jax.experimental.pallas import tpu as pltpu


# ----------------------------------------------------------------------------
# Lane-dense view helpers.
# ----------------------------------------------------------------------------
def _find_lanes(total: int):
    """Largest lane width (multiple of 128) that evenly divides `total`."""
    for lanes in (8192, 4096, 2048, 1024, 512, 256, 128):
        if lanes <= total and total % lanes == 0:
            return lanes
    return None


def _sublane_multiple(dtype) -> int:
    # Native TPU tile is (8,128) for 4-byte, (16,128) for 2-byte, (32,128)
    # for 1-byte dtypes (sub-32-bit packs along sublanes).
    itemsize = jnp.dtype(dtype).itemsize
    return max(8, 32 // max(itemsize, 1))


# ----------------------------------------------------------------------------
# hash_kernel=None: fresh-buffer identity as chunked HBM->HBM DMA (no VMEM
# round-trip, multiple outstanding descriptors for DMA-queue occupancy).
# ----------------------------------------------------------------------------
def _whole_copy_kernel(x_hbm_ref, o_hbm_ref, sem):
    cp = pltpu.make_async_copy(x_hbm_ref, o_hbm_ref, sem)
    cp.start()
    cp.wait()


def _chunked_copy_kernel(x_hbm_ref, o_hbm_ref, sems, *, chunk_bounds):
    copies = []
    for idx, (start, size) in enumerate(chunk_bounds):
        cp = pltpu.make_async_copy(
            x_hbm_ref.at[pl.ds(start, size)],
            o_hbm_ref.at[pl.ds(start, size)],
            sems.at[idx],
        )
        cp.start()
        copies.append(cp)
    for cp in copies:  # start all, then wait all
        cp.wait()


def _identity_dma(x: jnp.ndarray, *, max_chunks: int = 8) -> jnp.ndarray:
    total = x.size
    lanes = _find_lanes(total)
    if lanes is None:
        # Not factorable into a 128-multiple lane axis without a pad copy:
        # a single whole-array DMA is still correct and cheap at these sizes.
        return pl.pallas_call(
            _whole_copy_kernel,
            out_shape=jax.ShapeDtypeStruct(x.shape, x.dtype),
            in_specs=[pl.BlockSpec(memory_space=pl.ANY)],
            out_specs=pl.BlockSpec(memory_space=pl.ANY),
            scratch_shapes=[pltpu.SemaphoreType.DMA(())],
        )(x)

    rows = total // lanes
    x2d = x.reshape(rows, lanes)  # copy-free view

    n = max(1, min(max_chunks, rows))
    base, rem = divmod(rows, n)
    bounds, start = [], 0
    for i in range(n):
        size = base + (1 if i < rem else 0)
        if size:
            bounds.append((start, size))
            start += size

    kernel = functools.partial(_chunked_copy_kernel, chunk_bounds=tuple(bounds))
    out2d = pl.pallas_call(
        kernel,
        out_shape=jax.ShapeDtypeStruct((rows, lanes), x.dtype),
        in_specs=[pl.BlockSpec(memory_space=pl.ANY)],
        out_specs=pl.BlockSpec(memory_space=pl.ANY),
        scratch_shapes=[pltpu.SemaphoreType.DMA((len(bounds),))],
    )(x2d)
    return out2d.reshape(x.shape)


# ----------------------------------------------------------------------------
# Tiled, lane-dense pipeline (structure a concrete subclass would reuse).
# ----------------------------------------------------------------------------
def _copy_tile_kernel(x_ref, o_ref):
    # The abstract forward has no math; a subclass would put its hash-kernel
    # projection here in place of the pass-through.
    o_ref[...] = x_ref[...]


def _tiled_identity_call(x2d, rows, lanes, row_tile, *, input_buffers,
                         vmem_limit_bytes=None):
    in_spec_kwargs = {}
    if input_buffers != 2:
        in_spec_kwargs["pipeline_mode"] = pl.Buffered(input_buffers)
    in_spec = pl.BlockSpec((row_tile, lanes), lambda i: (i, 0), **in_spec_kwargs)

    cp_kwargs = dict(dimension_semantics=("parallel",))  # shards grid on v7x TCs
    if vmem_limit_bytes is not None:
        cp_kwargs["vmem_limit_bytes"] = vmem_limit_bytes

    return pl.pallas_call(
        _copy_tile_kernel,
        out_shape=jax.ShapeDtypeStruct((rows, lanes), x2d.dtype),
        grid=(pl.cdiv(rows, row_tile),),  # partial last block handled by Pallas
        in_specs=[in_spec],
        out_specs=pl.BlockSpec((row_tile, lanes), lambda i: (i, 0)),
        compiler_params=pltpu.CompilerParams(**cp_kwargs),
    )(x2d)


def hashable_module_tiled_forward(
    x: jnp.ndarray, *, target_block_bytes: int = 2 * 1024 * 1024
) -> jnp.ndarray:
    """Identity forward via the tiled HBM<->VMEM pipeline (subclass skeleton)."""
    total = x.size
    itemsize = jnp.dtype(x.dtype).itemsize
    sub = _sublane_multiple(x.dtype)

    lanes = _find_lanes(total)
    pad = 0
    if lanes is None:
        # Hardened fallback: never present a <128-wide last dim (masked vst).
        # One small pad copy in the wrapper is far cheaper than per-tile
        # masked partial stores.
        padded_total = -(-total // 128) * 128
        pad = padded_total - total
        flat = jnp.pad(x.reshape(-1), (0, pad))
        lanes = _find_lanes(padded_total) or 128
        rows = padded_total // lanes
        x2d = flat.reshape(rows, lanes)
    else:
        rows = total // lanes
        x2d = x.reshape(rows, lanes)  # copy-free view

    # ~2 MiB per block, rounded down to the packed-sublane multiple.
    row_tile = max(sub, target_block_bytes // (lanes * itemsize))
    row_tile -= row_tile % sub
    if row_tile >= rows:
        row_tile = rows  # full-dim block is always a legal block shape

    # Only raise the scoped-VMEM limit if a caller asked for big blocks
    # (3 input buffers + 2 output buffers must fit; v5e scoped default 16 MiB).
    block_bytes = row_tile * lanes * itemsize
    needed = 5 * block_bytes + (2 << 20)
    vmem_limit = min(needed, 48 << 20) if needed > (14 << 20) else None

    try:
        # Deeper input pipeline: pure-DMA workload benefits from a 3rd buffer.
        out2d = _tiled_identity_call(x2d, rows, lanes, row_tile,
                                     input_buffers=3,
                                     vmem_limit_bytes=vmem_limit)
    except Exception:
        # Graceful fallback to the default 2-deep pipeline.
        out2d = _tiled_identity_call(x2d, rows, lanes, row_tile,
                                     input_buffers=2,
                                     vmem_limit_bytes=vmem_limit)

    out_flat = out2d.reshape(-1)
    if pad:
        out_flat = out_flat[:total]
    return out_flat.reshape(x.shape)


# ----------------------------------------------------------------------------
# Public forward matching _HashableModule semantics.
# ----------------------------------------------------------------------------
def hashable_module_forward(
    x: jnp.ndarray, hash_kernel=None, *, materialize_copy: bool = False
) -> jnp.ndarray:
    """_HashableModule.forward: with hash_kernel=None this is the identity.

    By default this moves zero bytes (returns x, the true identity).  Set
    materialize_copy=True to get a fresh output buffer via a chunked
    HBM->HBM DMA (e.g. when the caller will mutate/donate the result).
    """
    if hash_kernel is None:
        if not materialize_copy:
            return x  # zero HBM traffic — the identity is free
        return _identity_dma(x)
    # TODO(synk): hashed-projection math is defined only in concrete subclasses.
    raise NotImplementedError("hash_kernel math lives in concrete subclasses")


if __name__ == "__main__":
    key = jax.random.PRNGKey(0)
    # Small NCHW input consistent with a conv-style hashable module.
    x = jax.random.normal(key, (2, 4, 16, 16), dtype=jnp.float32)

    y_noop = hashable_module_forward(x)                            # zero-copy
    y_copy = hashable_module_forward(x, materialize_copy=True)     # chunked DMA
    y_tiled = hashable_module_tiled_forward(x)                     # VMEM pipeline

    # Ragged shape (total=294, not a multiple of 128) exercising the hardened
    # pad-to-lane-dense fallback.
    x_odd = jax.random.normal(jax.random.PRNGKey(1), (2, 3, 7, 7),
                              dtype=jnp.float32)
    y_odd = hashable_module_tiled_forward(x_odd)

    jax.block_until_ready((y_noop, y_copy, y_tiled, y_odd))

    assert y_noop.shape == x.shape and y_noop.dtype == x.dtype
    assert y_copy.shape == x.shape and y_copy.dtype == x.dtype
    assert y_tiled.shape == x.shape and y_tiled.dtype == x.dtype
    assert y_odd.shape == x_odd.shape and y_odd.dtype == x_odd.dtype
    assert bool(jnp.array_equal(y_noop, x)), "zero-copy identity mismatch"
    assert bool(jnp.array_equal(y_copy, x)), "chunked DMA identity mismatch"
    assert bool(jnp.array_equal(y_tiled, x)), "tiled identity mismatch"
    assert bool(jnp.array_equal(y_odd, x_odd)), "padded tiled identity mismatch"

    print("KERNEL_OK")
</pallas_src>

<mosaic_0001>
module attributes {stable_mosaic.version = 11 : i64} {
  func.func @_chunked_copy_kernel(%arg0: memref<1x2048xf32, #tpu.memory_space<any>>, %arg1: memref<1x2048xf32, #tpu.memory_space<any>>, %arg2: memref<1x!tpu.dma_semaphore, #tpu.memory_space<semaphore_mem>>) attributes {dimension_semantics = [], scalar_prefetch = 0 : i64, scratch_operands = 1 : i64, tpu.core_type = #tpu.core_type<tc>} {
    %c0_i32 = arith.constant 0 : i32
    %c0_i32_0 = arith.constant 0 : i32
    %c0_i32_1 = arith.constant 0 : i32
    %0 = tpu.memref_slice %arg0[%c0_i32_0, %c0_i32_1] : memref<1x2048xf32, #tpu.memory_space<any>> -> memref<1x2048xf32, #tpu.memory_space<any>>
    %c0_i32_2 = arith.constant 0 : i32
    %c0_i32_3 = arith.constant 0 : i32
    %1 = tpu.memref_slice %arg1[%c0_i32_2, %c0_i32_3] : memref<1x2048xf32, #tpu.memory_space<any>> -> memref<1x2048xf32, #tpu.memory_space<any>>
    %2 = tpu.memref_slice %arg2[%c0_i32] : memref<1x!tpu.dma_semaphore, #tpu.memory_space<semaphore_mem>> -> memref<1x!tpu.dma_semaphore, #tpu.memory_space<semaphore_mem>>
    %3 = tpu.memref_squeeze %2 : memref<1x!tpu.dma_semaphore, #tpu.memory_space<semaphore_mem>> -> memref<!tpu.dma_semaphore, #tpu.memory_space<semaphore_mem>>
    tpu.enqueue_dma source(%0 : memref<1x2048xf32, #tpu.memory_space<any>>) target(%1 : memref<1x2048xf32, #tpu.memory_space<any>>) target_semaphore(%3 : memref<!tpu.dma_semaphore, #tpu.memory_space<semaphore_mem>>)
    %c0_i32_4 = arith.constant 0 : i32
    %c0_i32_5 = arith.constant 0 : i32
    %c0_i32_6 = arith.constant 0 : i32
    %4 = tpu.memref_slice %arg0[%c0_i32_5, %c0_i32_6] : memref<1x2048xf32, #tpu.memory_space<any>> -> memref<1x2048xf32, #tpu.memory_space<any>>
    %c0_i32_7 = arith.constant 0 : i32
    %c0_i32_8 = arith.constant 0 : i32
    %5 = tpu.memref_slice %arg1[%c0_i32_7, %c0_i32_8] : memref<1x2048xf32, #tpu.memory_space<any>> -> memref<1x2048xf32, #tpu.memory_space<any>>
    %6 = tpu.memref_slice %arg2[%c0_i32_4] : memref<1x!tpu.dma_semaphore, #tpu.memory_space<semaphore_mem>> -> memref<1x!tpu.dma_semaphore, #tpu.memory_space<semaphore_mem>>
    %7 = tpu.memref_squeeze %6 : memref<1x!tpu.dma_semaphore, #tpu.memory_space<semaphore_mem>> -> memref<!tpu.dma_semaphore, #tpu.memory_space<semaphore_mem>>
    tpu.wait_dma2 semaphore(%7 : memref<!tpu.dma_semaphore, #tpu.memory_space<semaphore_mem>>) src(%4 : memref<1x2048xf32, #tpu.memory_space<any>>) dst(%5 : memref<1x2048xf32, #tpu.memory_space<any>>)
    return
  }
}

</mosaic_0001>

<bundles_post_ra>
// kernel: tpu_custom_call.1
= control target key start
LH: loop header
LB: loop body
LE: loop exit
PB: predicated region body
PF: predicated region fallthrough
CT: control target
= control target key end

     0   :  { %s34_s6 = smov [#allocation2]   ;;  %s35_s7 = smov [#allocation3]   ;;  %s53_s0 = inlined_call_operand.hbm [shape: f32[1,2048], index: 0, kind: input, shape index: {}]   ;;  %s54_s1 = inlined_call_operand.hbm [shape: f32[1,2048], index: 1, kind: output, shape index: {}]  }
   0x1   :  { %s36_s8 = smov 0  }
   0x2   :  { %18 = dma.general %s53_s0, 256, %s54_s1, %s34_s6, %s35_s7, [#allocation4], %s36_s8, 0  }
   0x3   :  { %32 = dma.done.wait [#allocation2], 256 }
   0x4   :  { %33 = vsyncadd [#allocation2], 4294967040 }
   0x5   :  { %22 = vsyncmov [#allocation2] }
   0x8   :  { %s23_s13 = vpop.sfrf %22 }
   0x9   :  { %p28_p0 = scmp.ne.s32.totalorder %s23_s13, 0 }
   0xb   :  { %27 = shalt.err (%p28_p0)  }

</bundles_post_ra>
